<compile_context>
chip_gen: v7x
topology: tpu7x:2x2x1
jax: 0.10.0
libtpu: 0.0.40
codegen_flags: <defaults>
</compile_context>

<pallas_src>
import functools

import jax
import jax.numpy as jnp
from jax.experimental import pallas as pl
from jax.experimental.pallas import tpu as pltpu


# ----------------------------------------------------------------------------
# Generation-aware settings
# ----------------------------------------------------------------------------
def _tpu_settings():
    kind = ""
    try:
        kind = jax.devices()[0].device_kind.lower()
    except Exception:
        pass
    big_vmem = ("v5" in kind) or ("v6" in kind)          # 128 MiB physical VMEM
    is_v7 = "v7" in kind
    return {
        "vmem_limit": (64 << 20) if big_vmem else (32 << 20),
        "row_tile": 1024 if (big_vmem and not is_v7) else 512,
        "lane_tile": 4096 if (big_vmem and not is_v7) else 2048,
        # bf16 EUP exists on v6e / v7x only
        "bf16_exp": ("v6" in kind) or is_v7,
    }


def _cp(semantics, cfg):
    return pltpu.CompilerParams(dimension_semantics=semantics,
                                vmem_limit_bytes=cfg["vmem_limit"])


# ----------------------------------------------------------------------------
# Kernel 1: tiled row-wise linear  y = x @ w + b   (seasonal projection for
# [x_q; x_k] in one call).  Rows tiled with a cdiv grid (tail block overhangs,
# row-independent compute so no masking needed).  bf16 output.
# ----------------------------------------------------------------------------
def _linear_kernel(x_ref, w_ref, b_ref, y_ref):
    x = x_ref[...].astype(jnp.bfloat16)
    w = w_ref[...].astype(jnp.bfloat16)
    y = jnp.dot(x, w, preferred_element_type=jnp.float32) + b_ref[...]
    y_ref[...] = y.astype(y_ref.dtype)


def linear_rows(x2, w, b, out_dtype, cfg):
    rows, cin = x2.shape
    dout = w.shape[1]
    tile = rows if rows <= cfg["row_tile"] else cfg["row_tile"]
    return pl.pallas_call(
        _linear_kernel,
        out_shape=jax.ShapeDtypeStruct((rows, dout), out_dtype),
        grid=(pl.cdiv(rows, tile),),
        in_specs=[pl.BlockSpec((tile, cin), lambda i: (i, 0)),
                  pl.BlockSpec((cin, dout), lambda i: (0, 0)),
                  pl.BlockSpec((1, dout), lambda i: (0, 0))],
        out_specs=pl.BlockSpec((tile, dout), lambda i: (i, 0)),
        compiler_params=_cp(("parallel",), cfg),
    )(x2, w, b)


# ----------------------------------------------------------------------------
# Kernel 2: fused trend path for q and k heads in one single-block call:
#   normalize( Linear( ReLU( Linear( x @ Wt + bt ) ) ) )
# ----------------------------------------------------------------------------
def _trend_head_kernel(x_ref, wt_ref, bt_ref, w1_ref, b1_ref, w2_ref, b2_ref,
                       o_ref):
    for h in range(2):                                    # h=0: query, h=1: key
        x = x_ref[h].astype(jnp.bfloat16)                 # (B, Cin)
        t = jnp.dot(x, wt_ref[h].astype(jnp.bfloat16),
                    preferred_element_type=jnp.float32) + bt_ref[h]
        hid = jnp.dot(t.astype(jnp.bfloat16), w1_ref[h].astype(jnp.bfloat16),
                      preferred_element_type=jnp.float32) + b1_ref[h]
        hid = jnp.maximum(hid, 0.0)
        y = jnp.dot(hid.astype(jnp.bfloat16), w2_ref[h].astype(jnp.bfloat16),
                    preferred_element_type=jnp.float32) + b2_ref[h]
        ssq = jnp.sum(y * y, axis=-1, keepdims=True)
        # F.normalize: y / max(||y||, 1e-12)
        o_ref[h] = y * jax.lax.rsqrt(jnp.maximum(ssq, jnp.float32(1e-24)))


def trend_head_apply(xq_t, xk_t, wt_q, bt_q, wt_k, bt_k, head_q, head_k, cfg):
    B, Cin = xq_t.shape
    D = wt_q.shape[1]
    x = jnp.stack([xq_t, xk_t], axis=0)                   # (2, B, Cin)
    wt = jnp.stack([wt_q, wt_k], axis=0)
    bt = jnp.stack([bt_q, bt_k], axis=0)
    w1 = jnp.stack([head_q["w1"], head_k["w1"]], axis=0)
    b1 = jnp.stack([head_q["b1"], head_k["b1"]], axis=0)
    w2 = jnp.stack([head_q["w2"], head_k["w2"]], axis=0)
    b2 = jnp.stack([head_q["b2"], head_k["b2"]], axis=0)
    out = pl.pallas_call(
        _trend_head_kernel,
        out_shape=jax.ShapeDtypeStruct((2, B, D), jnp.float32),
        grid=(1,),
        in_specs=[pl.BlockSpec((2, B, Cin), lambda i: (0, 0, 0)),
                  pl.BlockSpec((2, Cin, D), lambda i: (0, 0, 0)),
                  pl.BlockSpec((2, 1, D), lambda i: (0, 0, 0)),
                  pl.BlockSpec((2, D, D), lambda i: (0, 0, 0)),
                  pl.BlockSpec((2, 1, D), lambda i: (0, 0, 0)),
                  pl.BlockSpec((2, D, D), lambda i: (0, 0, 0)),
                  pl.BlockSpec((2, 1, D), lambda i: (0, 0, 0))],
        out_specs=pl.BlockSpec((2, B, D), lambda i: (0, 0, 0)),
        compiler_params=_cp(("arbitrary",), cfg),
    )(x, wt, bt, w1, b1, w2, b2)
    return out[0], out[1]


# ----------------------------------------------------------------------------
# Kernel 3: MoCo negatives scan.  Queue streamed in (D, tk) bf16 tiles over K
# with an online logsumexp; leading size-2 "parallel" axis splits K across
# TensorCores (v7x); out-of-range (padded / overhanging) columns are masked.
# ----------------------------------------------------------------------------
def _moco_stats_kernel(q_ref, queue_ref, m_out, l_out, m_sc, l_sc, *,
                       inv_temp, tk, steps, k_total, bf16_exp):
    h = pl.program_id(0)
    kk = pl.program_id(1)

    @pl.when(kk == 0)
    def _():
        m_sc[...] = jnp.full_like(m_sc, -1e30)
        l_sc[...] = jnp.zeros_like(l_sc)

    s = jnp.dot(q_ref[...].astype(jnp.bfloat16), queue_ref[...],
                preferred_element_type=jnp.float32) * inv_temp       # (B, tk)
    col = (h * steps + kk) * tk + jax.lax.broadcasted_iota(
        jnp.int32, (1, tk), 1)
    valid = col < k_total                                            # (1, tk)
    s = jnp.where(valid, s, jnp.float32(-1e30))

    m_prev = m_sc[...]
    m_new = jnp.maximum(m_prev, jnp.max(s, axis=-1, keepdims=True))
    e = s - m_new
    if bf16_exp:
        e = e.astype(jnp.bfloat16)
    p_sum = jnp.sum(jnp.exp(e).astype(jnp.float32) * valid.astype(jnp.float32),
                    axis=-1, keepdims=True)
    l_sc[...] = l_sc[...] * jnp.exp(m_prev - m_new) + p_sum
    m_sc[...] = m_new

    @pl.when(kk == steps - 1)
    def _():
        m_out[...] = m_sc[...].reshape(m_out.shape)
        l_out[...] = l_sc[...].reshape(l_out.shape)


def moco_loss(q, k, queue_bf16, temp, cfg):
    B, D = q.shape
    K = queue_bf16.shape[1]
    k_half = pl.cdiv(K, 2)
    tk = min(cfg["lane_tile"], ((k_half + 127) // 128) * 128)
    steps = pl.cdiv(k_half, tk)
    inv_temp = float(1.0 / temp)
    kern = functools.partial(_moco_stats_kernel, inv_temp=inv_temp, tk=tk,
                             steps=steps, k_total=K,
                             bf16_exp=cfg["bf16_exp"])
    m_out, l_out = pl.pallas_call(
        kern,
        out_shape=(jax.ShapeDtypeStruct((2, B, 1), jnp.float32),
                   jax.ShapeDtypeStruct((2, B, 1), jnp.float32)),
        grid=(2, steps),
        in_specs=[pl.BlockSpec((B, D), lambda h, kk: (0, 0)),
                  pl.BlockSpec((D, tk), lambda h, kk: (0, h * steps + kk))],
        out_specs=[pl.BlockSpec((1, B, 1), lambda h, kk: (h, 0, 0)),
                   pl.BlockSpec((1, B, 1), lambda h, kk: (h, 0, 0))],
        scratch_shapes=[pltpu.VMEM((B, 1), jnp.float32),
                        pltpu.VMEM((B, 1), jnp.float32)],
        compiler_params=_cp(("parallel", "arbitrary"), cfg),
        cost_estimate=pl.CostEstimate(flops=2 * B * D * K + 6 * B * K,
                                      transcendentals=B * K,
                                      bytes_accessed=2 * D * K + 4 * B * D),
    )(q, queue_bf16)

    # positive logit from the same bf16-rounded values the MXU sees (f32 acc)
    qb = q.astype(jnp.bfloat16).astype(jnp.float32)
    kb = k.astype(jnp.bfloat16).astype(jnp.float32)
    lpos = jnp.sum(qb * kb, axis=-1, keepdims=True) * inv_temp       # (B, 1)

    m0, l0 = m_out[0], l_out[0]
    m1, l1 = m_out[1], l_out[1]
    m_tot = jnp.maximum(jnp.maximum(m0, m1), lpos)
    l_tot = (l0 * jnp.exp(m0 - m_tot) + l1 * jnp.exp(m1 - m_tot)
             + jnp.exp(lpos - m_tot))
    lse = m_tot + jnp.log(l_tot)
    return jnp.mean(lse - lpos)                     # cross_entropy w/ label 0


# ----------------------------------------------------------------------------
# Kernel 4: instance-contrastive (frequency-domain) loss.  Inputs stay
# (B, Fq, C) bf16; the kernel grids over frequency blocks (index_map on the
# middle dim), builds a (fb, 2B, 2B) similarity block, masks the diagonal with
# a once-built bias scratch, and accumulates sum(lse - positive) into a scalar.
# Overhanging frequency slabs are masked out.
# ----------------------------------------------------------------------------
def _icl_kernel(z1_ref, z2_ref, o_ref, bias_ref, *, n_freq, bf16_exp):
    f = pl.program_id(0)
    B, fb, C = z1_ref.shape
    N = 2 * B

    @pl.when(f == 0)
    def _():
        o_ref[...] = jnp.zeros_like(o_ref)
        r = jax.lax.broadcasted_iota(jnp.int32, (N, N), 0)
        c = jax.lax.broadcasted_iota(jnp.int32, (N, N), 1)
        bias_ref[...] = jnp.where(r == c, jnp.float32(-1e30), jnp.float32(0.0))

    z1 = z1_ref[...]                                        # (B, fb, C) bf16
    z2 = z2_ref[...]
    z = jnp.concatenate([z1, z2], axis=0)                   # (N, fb, C)
    sim = jnp.einsum('afc,bfc->fab', z, z,
                     preferred_element_type=jnp.float32)    # (fb, N, N)
    sim = sim + bias_ref[...][None, :, :]
    mx = jnp.max(sim, axis=-1, keepdims=True)               # (fb, N, 1)
    e = sim - mx
    if bf16_exp:
        e = e.astype(jnp.bfloat16)
    lse = mx[..., 0] + jnp.log(
        jnp.sum(jnp.exp(e).astype(jnp.float32), axis=-1))   # (fb, N)
    lse_sum = jnp.sum(lse, axis=-1, keepdims=True)          # (fb, 1)

    # positives from the same bf16-rounded values (f32 accumulation), symmetric
    pos = jnp.sum(z1.astype(jnp.float32) * z2.astype(jnp.float32), axis=-1)
    pos_sum = jnp.sum(pos, axis=0, keepdims=True)           # (1, fb)

    f0 = f * fb
    cidx = f0 + jax.lax.broadcasted_iota(jnp.int32, (fb, 1), 0)
    ridx = f0 + jax.lax.broadcasted_iota(jnp.int32, (1, fb), 1)
    lse_tot = jnp.sum(jnp.where(cidx < n_freq, lse_sum, 0.0))
    pos_tot = jnp.sum(jnp.where(ridx < n_freq, pos_sum, 0.0))
    o_ref[...] += (lse_tot - 2.0 * pos_tot).reshape(1, 1)


def instance_contrastive_sum(z1, z2, cfg):
    """sum over (frequency, row) of (logsumexp_no_diag - positive)."""
    B, nF, C = z1.shape
    N = 2 * B
    per_f = 8 * B * C + 12 * N * N          # rough bytes per frequency slab
    fb = max(1, (4 << 20) // max(per_f, 1))
    if fb >= nF:
        fb = nF                              # full dim -> no alignment needed
    else:
        fb = max(8, (fb // 8) * 8)           # second-minor block dim: mult of 8
    kern = functools.partial(_icl_kernel, n_freq=nF, bf16_exp=cfg["bf16_exp"])
    out = pl.pallas_call(
        kern,
        out_shape=jax.ShapeDtypeStruct((1, 1), jnp.float32),
        grid=(pl.cdiv(nF, fb),),
        in_specs=[pl.BlockSpec((B, fb, C), lambda f: (0, f, 0)),
                  pl.BlockSpec((B, fb, C), lambda f: (0, f, 0))],
        out_specs=pl.BlockSpec((1, 1), lambda f: (0, 0)),
        scratch_shapes=[pltpu.VMEM((N, N), jnp.float32)],
        compiler_params=_cp(("arbitrary",), cfg),
        cost_estimate=pl.CostEstimate(
            flops=2 * nF * N * N * C + 6 * nF * N * N,
            transcendentals=nF * N * N,
            bytes_accessed=4 * B * nF * C + 4),
    )(z1, z2)
    return out[0, 0]


# ----------------------------------------------------------------------------
# Glue (plain JAX)
# ----------------------------------------------------------------------------
def l2_normalize(x, axis=-1, eps=1e-12):
    ssq = jnp.sum(x * x, axis=axis, keepdims=True)
    return x * jax.lax.rsqrt(jnp.maximum(ssq, eps * eps))


def convert_coeff(x, eps=1e-6):
    amp = jnp.sqrt((x.real + eps) ** 2 + (x.imag + eps) ** 2)
    phase = jnp.arctan2(x.imag, x.real + eps)
    return amp, phase


def cost_forward(params, x_q, x_k, queue, queue_ptr, rand_idx,
                 temp=0.07, alpha=0.05, m=0.999):
    cfg = _tpu_settings()
    B, T, Cin = x_q.shape
    D = params["encoder_q"]["ws"].shape[1]

    # ---- momentum update of key encoder / key head (no-grad in torch) ----
    blend = lambda pk, pq: jax.lax.stop_gradient(pk * m + pq * (1.0 - m))
    enc_k = jax.tree_util.tree_map(blend, params["encoder_k"], params["encoder_q"])
    head_k = jax.tree_util.tree_map(blend, params["head_k"], params["head_q"])

    # ---- trend path: only t = rand_idx is consumed -> fused linear+head+norm ----
    q_t, k_t = trend_head_apply(
        x_q[:, rand_idx], x_k[:, rand_idx],
        params["encoder_q"]["wt"], params["encoder_q"]["bt"],
        enc_k["wt"], enc_k["bt"],
        params["head_q"], head_k, cfg)
    k_t = jax.lax.stop_gradient(k_t)               # key branch runs under no_grad

    # ---- MoCo InfoNCE against the (detached) queue, streamed over K ----
    queue_bf16 = jax.lax.stop_gradient(queue).astype(jnp.bfloat16)
    loss = moco_loss(q_t, k_t, queue_bf16, temp, cfg)

    # ---- dequeue & enqueue (functional stand-in for the registered buffers) ----
    # NOTE: like MoCo, assumes K % batch == 0 (no wrap-around handling).
    new_queue = jax.lax.dynamic_update_slice(queue, k_t.T, (0, queue_ptr))
    new_ptr = (queue_ptr + B) % queue.shape[1]

    # ---- seasonal path: encoder_q on [x_q; x_k] (seasonal weights only) ----
    x_cat2 = jnp.concatenate([x_q, x_k], axis=0).reshape(2 * B * T, Cin)
    s_cat = linear_rows(x_cat2, params["encoder_q"]["ws"],
                        params["encoder_q"]["bs"], jnp.bfloat16, cfg)
    s_cat = s_cat.reshape(2 * B, T, D)
    q_s = l2_normalize(s_cat[:B].astype(jnp.float32))
    k_s = l2_normalize(s_cat[B:].astype(jnp.float32))
    # TODO(synk): torch.fft.rfft has no Pallas primitive; computed with jnp.fft.rfft (XLA FFT).
    q_freq = jnp.fft.rfft(q_s, axis=1)
    k_freq = jnp.fft.rfft(k_s, axis=1)
    q_amp, q_phase = convert_coeff(q_freq)
    k_amp, k_phase = convert_coeff(k_freq)
    Fq = q_amp.shape[1]

    sum_amp = instance_contrastive_sum(q_amp.astype(jnp.bfloat16),
                                       k_amp.astype(jnp.bfloat16), cfg)
    sum_phase = instance_contrastive_sum(q_phase.astype(jnp.bfloat16),
                                         k_phase.astype(jnp.bfloat16), cfg)
    seasonal_loss = (sum_amp + sum_phase) / (Fq * 2 * B)

    loss = loss + alpha * (seasonal_loss / 2.0)
    new_state = {"queue": new_queue, "queue_ptr": new_ptr,
                 "encoder_k": enc_k, "head_k": head_k}
    return loss, new_state


# ----------------------------------------------------------------------------
# Deterministic parameter / input construction
# ----------------------------------------------------------------------------
def _linear(kw, kb, fan_in, fan_out):
    bound = 1.0 / (fan_in ** 0.5)
    w = jax.random.uniform(kw, (fan_in, fan_out), jnp.float32, -bound, bound)
    b = jax.random.uniform(kb, (1, fan_out), jnp.float32, -bound, bound)
    return w, b


if __name__ == "__main__":
    # dim=128 (module default) keeps every output slab lane-dense.
    B, T, Cin, D, K = 2, 8, 4, 128, 256
    key = jax.random.PRNGKey(0)
    keys = jax.random.split(key, 12)

    # synthetic CoST encoder stand-in (per-timestep trend / seasonal linear
    # projections); the real encoder_q/encoder_k modules are external to CoSTModel.
    wt, bt = _linear(keys[0], keys[1], Cin, D)
    ws, bs = _linear(keys[2], keys[3], Cin, D)
    encoder_q = {"wt": wt, "bt": bt, "ws": ws, "bs": bs}
    encoder_k = jax.tree_util.tree_map(jnp.array, encoder_q)      # copied at init

    w1, b1 = _linear(keys[4], keys[5], D, D)
    w2, b2 = _linear(keys[6], keys[7], D, D)
    head_q = {"w1": w1, "b1": b1, "w2": w2, "b2": b2}
    head_k = jax.tree_util.tree_map(jnp.array, head_q)            # copied at init

    params = {"encoder_q": encoder_q, "encoder_k": encoder_k,
              "head_q": head_q, "head_k": head_k}

    queue = jax.random.normal(keys[8], (D, K), jnp.float32)
    queue = queue * jax.lax.rsqrt(jnp.sum(queue * queue, axis=0, keepdims=True))

    x_q = jax.random.normal(keys[9], (B, T, Cin), jnp.float32)
    x_k = jax.random.normal(keys[10], (B, T, Cin), jnp.float32)

    # TODO(synk): np.random.randint(0, x_q.shape[1]) replaced by a fixed deterministic index.
    rand_idx = 3

    loss, state = cost_forward(params, x_q, x_k, queue, 0, rand_idx,
                               temp=0.07, alpha=0.05, m=0.999)
    jax.block_until_ready(loss)
    jax.block_until_ready(state["queue"])
    print("KERNEL_OK")
</pallas_src>

<mosaic_0001>
module attributes {stable_mosaic.version = 11 : i64} {
  func.func @_trend_head_kernel(%arg0: i32, %arg1: memref<2x2x4xf32, #tpu.memory_space<vmem>>, %arg2: memref<2x4x128xf32, #tpu.memory_space<vmem>>, %arg3: memref<2x1x128xf32, #tpu.memory_space<vmem>>, %arg4: memref<2x128x128xf32, #tpu.memory_space<vmem>>, %arg5: memref<2x1x128xf32, #tpu.memory_space<vmem>>, %arg6: memref<2x128x128xf32, #tpu.memory_space<vmem>>, %arg7: memref<2x1x128xf32, #tpu.memory_space<vmem>>, %arg8: memref<2x2x128xf32, #tpu.memory_space<vmem>>) attributes {dimension_semantics = [#tpu.dimension_semantics<arbitrary>], iteration_bounds = array<i64: 1>, scalar_prefetch = 0 : i64, scratch_operands = 0 : i64, tpu.core_type = #tpu.core_type<tc>, window_params = [{pipeline_mode = #tpu.pipeline_mode<synchronous>, transform_indices = @transform_0, window_bounds = array<i64: 2, 2, 4>}, {pipeline_mode = #tpu.pipeline_mode<synchronous>, transform_indices = @transform_1, window_bounds = array<i64: 2, 4, 128>}, {pipeline_mode = #tpu.pipeline_mode<synchronous>, transform_indices = @transform_2, window_bounds = array<i64: 2, 1, 128>}, {pipeline_mode = #tpu.pipeline_mode<synchronous>, transform_indices = @transform_3, window_bounds = array<i64: 2, 128, 128>}, {pipeline_mode = #tpu.pipeline_mode<synchronous>, transform_indices = @transform_4, window_bounds = array<i64: 2, 1, 128>}, {pipeline_mode = #tpu.pipeline_mode<synchronous>, transform_indices = @transform_5, window_bounds = array<i64: 2, 128, 128>}, {pipeline_mode = #tpu.pipeline_mode<synchronous>, transform_indices = @transform_6, window_bounds = array<i64: 2, 1, 128>}, {pipeline_mode = #tpu.pipeline_mode<synchronous>, transform_indices = @transform_7, window_bounds = array<i64: 2, 2, 128>}]} {
    %c0 = arith.constant 0 : index
    %c0_0 = arith.constant 0 : index
    %c0_1 = arith.constant 0 : index
    %0 = vector.load %arg1[%c0, %c0_0, %c0_1] : memref<2x2x4xf32, #tpu.memory_space<vmem>>, vector<1x2x4xf32>
    %1 = vector.shape_cast %0 : vector<1x2x4xf32> to vector<2x4xf32>
    %2 = arith.truncf %1 : vector<2x4xf32> to vector<2x4xbf16>
    %c0_2 = arith.constant 0 : index
    %c0_3 = arith.constant 0 : index
    %c0_4 = arith.constant 0 : index
    %3 = vector.load %arg2[%c0_2, %c0_3, %c0_4] : memref<2x4x128xf32, #tpu.memory_space<vmem>>, vector<1x4x128xf32>
    %4 = vector.shape_cast %3 : vector<1x4x128xf32> to vector<4x128xf32>
    %5 = arith.truncf %4 : vector<4x128xf32> to vector<4x128xbf16>
    %cst = arith.constant dense<0.000000e+00> : vector<2x128xf32>
    %6 = tpu.matmul %2, %5, %cst {dimension_numbers = #tpu.dot_dimension_numbers<[1], [0], [0], [1], [0, 0, 1, 1], [], []>} : vector<2x4xbf16>, vector<4x128xbf16>, vector<2x128xf32> -> vector<2x128xf32>
    %c0_5 = arith.constant 0 : index
    %c0_6 = arith.constant 0 : index
    %c0_7 = arith.constant 0 : index
    %7 = vector.load %arg3[%c0_5, %c0_6, %c0_7] : memref<2x1x128xf32, #tpu.memory_space<vmem>>, vector<1x1x128xf32>
    %8 = vector.shape_cast %7 : vector<1x1x128xf32> to vector<1x128xf32>
    %9 = vector.broadcast %8 : vector<1x128xf32> to vector<2x128xf32>
    %10 = arith.addf %6, %9 : vector<2x128xf32>
    %11 = arith.truncf %10 : vector<2x128xf32> to vector<2x128xbf16>
    %c0_8 = arith.constant 0 : index
    %c0_9 = arith.constant 0 : index
    %c0_10 = arith.constant 0 : index
    %12 = vector.load %arg4[%c0_8, %c0_9, %c0_10] : memref<2x128x128xf32, #tpu.memory_space<vmem>>, vector<1x128x128xf32>
    %13 = vector.shape_cast %12 : vector<1x128x128xf32> to vector<128x128xf32>
    %14 = arith.truncf %13 : vector<128x128xf32> to vector<128x128xbf16>
    %cst_11 = arith.constant dense<0.000000e+00> : vector<2x128xf32>
    %15 = tpu.matmul %11, %14, %cst_11 {dimension_numbers = #tpu.dot_dimension_numbers<[1], [0], [0], [1], [0, 0, 1, 1], [], []>} : vector<2x128xbf16>, vector<128x128xbf16>, vector<2x128xf32> -> vector<2x128xf32>
    %c0_12 = arith.constant 0 : index
    %c0_13 = arith.constant 0 : index
    %c0_14 = arith.constant 0 : index
    %16 = vector.load %arg5[%c0_12, %c0_13, %c0_14] : memref<2x1x128xf32, #tpu.memory_space<vmem>>, vector<1x1x128xf32>
    %17 = vector.shape_cast %16 : vector<1x1x128xf32> to vector<1x128xf32>
    %18 = vector.broadcast %17 : vector<1x128xf32> to vector<2x128xf32>
    %19 = arith.addf %15, %18 : vector<2x128xf32>
    %cst_15 = arith.constant 0.000000e+00 : f32
    %20 = vector.broadcast %cst_15 : f32 to vector<2x128xf32>
    %21 = arith.maximumf %19, %20 : vector<2x128xf32>
    %22 = arith.truncf %21 : vector<2x128xf32> to vector<2x128xbf16>
    %c0_16 = arith.constant 0 : index
    %c0_17 = arith.constant 0 : index
    %c0_18 = arith.constant 0 : index
    %23 = vector.load %arg6[%c0_16, %c0_17, %c0_18] : memref<2x128x128xf32, #tpu.memory_space<vmem>>, vector<1x128x128xf32>
    %24 = vector.shape_cast %23 : vector<1x128x128xf32> to vector<128x128xf32>
    %25 = arith.truncf %24 : vector<128x128xf32> to vector<128x128xbf16>
    %cst_19 = arith.constant dense<0.000000e+00> : vector<2x128xf32>
    %26 = tpu.matmul %22, %25, %cst_19 {dimension_numbers = #tpu.dot_dimension_numbers<[1], [0], [0], [1], [0, 0, 1, 1], [], []>} : vector<2x128xbf16>, vector<128x128xbf16>, vector<2x128xf32> -> vector<2x128xf32>
    %c0_20 = arith.constant 0 : index
    %c0_21 = arith.constant 0 : index
    %c0_22 = arith.constant 0 : index
    %27 = vector.load %arg7[%c0_20, %c0_21, %c0_22] : memref<2x1x128xf32, #tpu.memory_space<vmem>>, vector<1x1x128xf32>
    %28 = vector.shape_cast %27 : vector<1x1x128xf32> to vector<1x128xf32>
    %29 = vector.broadcast %28 : vector<1x128xf32> to vector<2x128xf32>
    %30 = arith.addf %26, %29 : vector<2x128xf32>
    %31 = arith.mulf %30, %30 : vector<2x128xf32>
    %cst_23 = arith.constant dense<0.000000e+00> : vector<2xf32>
    %32 = vector.multi_reduction <add>, %31, %cst_23 [1] : vector<2x128xf32> to vector<2xf32>
    %33 = vector.shape_cast %32 : vector<2xf32> to vector<2x1xf32>
    %cst_24 = arith.constant 1.000000e-24 : f32
    %34 = vector.broadcast %cst_24 : f32 to vector<2x1xf32>
    %35 = arith.maximumf %33, %34 : vector<2x1xf32>
    %36 = math.rsqrt %35 : vector<2x1xf32>
    %37 = vector.broadcast %36 : vector<2x1xf32> to vector<2x128xf32>
    %38 = arith.mulf %30, %37 : vector<2x128xf32>
    %c0_25 = arith.constant 0 : index
    %c0_26 = arith.constant 0 : index
    %c0_27 = arith.constant 0 : index
    %39 = vector.load %arg8[%c0_25, %c0_26, %c0_27] : memref<2x2x128xf32, #tpu.memory_space<vmem>>, vector<1x2x128xf32>
    %40 = vector.shape_cast %39 : vector<1x2x128xf32> to vector<2x128xf32>
    %41 = vector.shape_cast %38 : vector<2x128xf32> to vector<1x2x128xf32>
    tpu.vector_store %arg8[%c0_25, %c0_26, %c0_27], %41 {strides = array<i32>} : memref<2x2x128xf32, #tpu.memory_space<vmem>>, vector<1x2x128xf32>,
    %c1 = arith.constant 1 : index
    %c0_28 = arith.constant 0 : index
    %c0_29 = arith.constant 0 : index
    %42 = vector.load %arg1[%c1, %c0_28, %c0_29] : memref<2x2x4xf32, #tpu.memory_space<vmem>>, vector<1x2x4xf32>
    %43 = vector.shape_cast %42 : vector<1x2x4xf32> to vector<2x4xf32>
    %44 = arith.truncf %43 : vector<2x4xf32> to vector<2x4xbf16>
    %c1_30 = arith.constant 1 : index
    %c0_31 = arith.constant 0 : index
    %c0_32 = arith.constant 0 : index
    %45 = vector.load %arg2[%c1_30, %c0_31, %c0_32] : memref<2x4x128xf32, #tpu.memory_space<vmem>>, vector<1x4x128xf32>
    %46 = vector.shape_cast %45 : vector<1x4x128xf32> to vector<4x128xf32>
    %47 = arith.truncf %46 : vector<4x128xf32> to vector<4x128xbf16>
    %cst_33 = arith.constant dense<0.000000e+00> : vector<2x128xf32>
    %48 = tpu.matmul %44, %47, %cst_33 {dimension_numbers = #tpu.dot_dimension_numbers<[1], [0], [0], [1], [0, 0, 1, 1], [], []>} : vector<2x4xbf16>, vector<4x128xbf16>, vector<2x128xf32> -> vector<2x128xf32>
    %c1_34 = arith.constant 1 : index
    %c0_35 = arith.constant 0 : index
    %c0_36 = arith.constant 0 : index
    %49 = vector.load %arg3[%c1_34, %c0_35, %c0_36] : memref<2x1x128xf32, #tpu.memory_space<vmem>>, vector<1x1x128xf32>
    %50 = vector.shape_cast %49 : vector<1x1x128xf32> to vector<1x128xf32>
    %51 = vector.broadcast %50 : vector<1x128xf32> to vector<2x128xf32>
    %52 = arith.addf %48, %51 : vector<2x128xf32>
    %53 = arith.truncf %52 : vector<2x128xf32> to vector<2x128xbf16>
    %c1_37 = arith.constant 1 : index
    %c0_38 = arith.constant 0 : index
    %c0_39 = arith.constant 0 : index
    %54 = vector.load %arg4[%c1_37, %c0_38, %c0_39] : memref<2x128x128xf32, #tpu.memory_space<vmem>>, vector<1x128x128xf32>
    %55 = vector.shape_cast %54 : vector<1x128x128xf32> to vector<128x128xf32>
    %56 = arith.truncf %55 : vector<128x128xf32> to vector<128x128xbf16>
    %cst_40 = arith.constant dense<0.000000e+00> : vector<2x128xf32>
    %57 = tpu.matmul %53, %56, %cst_40 {dimension_numbers = #tpu.dot_dimension_numbers<[1], [0], [0], [1], [0, 0, 1, 1], [], []>} : vector<2x128xbf16>, vector<128x128xbf16>, vector<2x128xf32> -> vector<2x128xf32>
    %c1_41 = arith.constant 1 : index
    %c0_42 = arith.constant 0 : index
    %c0_43 = arith.constant 0 : index
    %58 = vector.load %arg5[%c1_41, %c0_42, %c0_43] : memref<2x1x128xf32, #tpu.memory_space<vmem>>, vector<1x1x128xf32>
    %59 = vector.shape_cast %58 : vector<1x1x128xf32> to vector<1x128xf32>
    %60 = vector.broadcast %59 : vector<1x128xf32> to vector<2x128xf32>
    %61 = arith.addf %57, %60 : vector<2x128xf32>
    %cst_44 = arith.constant 0.000000e+00 : f32
    %62 = vector.broadcast %cst_44 : f32 to vector<2x128xf32>
    %63 = arith.maximumf %61, %62 : vector<2x128xf32>
    %64 = arith.truncf %63 : vector<2x128xf32> to vector<2x128xbf16>
    %c1_45 = arith.constant 1 : index
    %c0_46 = arith.constant 0 : index
    %c0_47 = arith.constant 0 : index
    %65 = vector.load %arg6[%c1_45, %c0_46, %c0_47] : memref<2x128x128xf32, #tpu.memory_space<vmem>>, vector<1x128x128xf32>
    %66 = vector.shape_cast %65 : vector<1x128x128xf32> to vector<128x128xf32>
    %67 = arith.truncf %66 : vector<128x128xf32> to vector<128x128xbf16>
    %cst_48 = arith.constant dense<0.000000e+00> : vector<2x128xf32>
    %68 = tpu.matmul %64, %67, %cst_48 {dimension_numbers = #tpu.dot_dimension_numbers<[1], [0], [0], [1], [0, 0, 1, 1], [], []>} : vector<2x128xbf16>, vector<128x128xbf16>, vector<2x128xf32> -> vector<2x128xf32>
    %c1_49 = arith.constant 1 : index
    %c0_50 = arith.constant 0 : index
    %c0_51 = arith.constant 0 : index
    %69 = vector.load %arg7[%c1_49, %c0_50, %c0_51] : memref<2x1x128xf32, #tpu.memory_space<vmem>>, vector<1x1x128xf32>
    %70 = vector.shape_cast %69 : vector<1x1x128xf32> to vector<1x128xf32>
    %71 = vector.broadcast %70 : vector<1x128xf32> to vector<2x128xf32>
    %72 = arith.addf %68, %71 : vector<2x128xf32>
    %73 = arith.mulf %72, %72 : vector<2x128xf32>
    %cst_52 = arith.constant dense<0.000000e+00> : vector<2xf32>
    %74 = vector.multi_reduction <add>, %73, %cst_52 [1] : vector<2x128xf32> to vector<2xf32>
    %75 = vector.shape_cast %74 : vector<2xf32> to vector<2x1xf32>
    %cst_53 = arith.constant 1.000000e-24 : f32
    %76 = vector.broadcast %cst_53 : f32 to vector<2x1xf32>
    %77 = arith.maximumf %75, %76 : vector<2x1xf32>
    %78 = math.rsqrt %77 : vector<2x1xf32>
    %79 = vector.broadcast %78 : vector<2x1xf32> to vector<2x128xf32>
    %80 = arith.mulf %72, %79 : vector<2x128xf32>
    %c1_54 = arith.constant 1 : index
    %c0_55 = arith.constant 0 : index
    %c0_56 = arith.constant 0 : index
    %81 = vector.load %arg8[%c1_54, %c0_55, %c0_56] : memref<2x2x128xf32, #tpu.memory_space<vmem>>, vector<1x2x128xf32>
    %82 = vector.shape_cast %81 : vector<1x2x128xf32> to vector<2x128xf32>
    %83 = vector.shape_cast %80 : vector<2x128xf32> to vector<1x2x128xf32>
    tpu.vector_store %arg8[%c1_54, %c0_55, %c0_56], %83 {strides = array<i32>} : memref<2x2x128xf32, #tpu.memory_space<vmem>>, vector<1x2x128xf32>,
    return
  }
  func.func @transform_0(%arg0: i32) -> (i32, i32, i32) {
    %c0_i32 = arith.constant 0 : i32
    %c0_i32_0 = arith.constant 0 : i32
    %c0_i32_1 = arith.constant 0 : i32
    %c0_i32_2 = arith.constant 0 : i32
    return %c0_i32, %c0_i32_0, %c0_i32_1 : i32, i32, i32
  }
  func.func @transform_1(%arg0: i32) -> (i32, i32, i32) {
    %c0_i32 = arith.constant 0 : i32
    %c0_i32_0 = arith.constant 0 : i32
    %c0_i32_1 = arith.constant 0 : i32
    %c0_i32_2 = arith.constant 0 : i32
    return %c0_i32, %c0_i32_0, %c0_i32_1 : i32, i32, i32
  }
  func.func @transform_2(%arg0: i32) -> (i32, i32, i32) {
    %c0_i32 = arith.constant 0 : i32
    %c0_i32_0 = arith.constant 0 : i32
    %c0_i32_1 = arith.constant 0 : i32
    %c0_i32_2 = arith.constant 0 : i32
    return %c0_i32, %c0_i32_0, %c0_i32_1 : i32, i32, i32
  }
  func.func @transform_3(%arg0: i32) -> (i32, i32, i32) {
    %c0_i32 = arith.constant 0 : i32
    %c0_i32_0 = arith.constant 0 : i32
    %c0_i32_1 = arith.constant 0 : i32
    %c0_i32_2 = arith.constant 0 : i32
    return %c0_i32, %c0_i32_0, %c0_i32_1 : i32, i32, i32
  }
  func.func @transform_4(%arg0: i32) -> (i32, i32, i32) {
    %c0_i32 = arith.constant 0 : i32
    %c0_i32_0 = arith.constant 0 : i32
    %c0_i32_1 = arith.constant 0 : i32
    %c0_i32_2 = arith.constant 0 : i32
    return %c0_i32, %c0_i32_0, %c0_i32_1 : i32, i32, i32
  }
  func.func @transform_5(%arg0: i32) -> (i32, i32, i32) {
    %c0_i32 = arith.constant 0 : i32
    %c0_i32_0 = arith.constant 0 : i32
    %c0_i32_1 = arith.constant 0 : i32
    %c0_i32_2 = arith.constant 0 : i32
    return %c0_i32, %c0_i32_0, %c0_i32_1 : i32, i32, i32
  }
  func.func @transform_6(%arg0: i32) -> (i32, i32, i32) {
    %c0_i32 = arith.constant 0 : i32
    %c0_i32_0 = arith.constant 0 : i32
    %c0_i32_1 = arith.constant 0 : i32
    %c0_i32_2 = arith.constant 0 : i32
    return %c0_i32, %c0_i32_0, %c0_i32_1 : i32, i32, i32
  }
  func.func @transform_7(%arg0: i32) -> (i32, i32, i32) {
    %c0_i32 = arith.constant 0 : i32
    %c0_i32_0 = arith.constant 0 : i32
    %c0_i32_1 = arith.constant 0 : i32
    %c0_i32_2 = arith.constant 0 : i32
    return %c0_i32, %c0_i32_0, %c0_i32_1 : i32, i32, i32
  }
}

</mosaic_0001>

<bundles_post_ra>
// kernel: tpu_custom_call.1
= control target key start
LH: loop header
LB: loop body
LE: loop exit
PB: predicated region body
PF: predicated region fallthrough
CT: control target
= control target key end

     0   :  { %12 = vsyncpa [#allocation3], 0  ;;  %s999_s0 = inlined_call_operand.hbm [shape: f32[2,2,4], index: 0, kind: input, shape index: {}]   ;;  %s1000_s1 = inlined_call_operand.hbm [shape: f32[2,4,128], index: 1, kind: input, shape index: {}]   ;;  %s1001_s2 = inlined_call_operand.vmem [shape: f32[2,1,128], index: 2, kind: input, shape index: {}]   ;;  %s1002_s3 = inlined_call_operand.hbm [shape: f32[2,128,128], index: 3, kind: input, shape index: {}]   ;;  %s1003_s4 = inlined_call_operand.vmem [shape: f32[2,1,128], index: 4, kind: input, shape index: {}]   ;;  %s1004_s5 = inlined_call_operand.hbm [shape: f32[2,128,128], index: 5, kind: input, shape index: {}]   ;;  %s1005_s6 = inlined_call_operand.vmem [shape: f32[2,1,128], index: 6, kind: input, shape index: {}]   ;;  %s1006_s7 = inlined_call_operand.hbm [shape: f32[2,2,128], index: 7, kind: output, shape index: {}]  }
   0x1   :  { %13 = vsyncpa [#allocation6], 0 }
   0x2   :  { %14 = vsyncpa [#allocation9], 0 }
   0x3   :  { %15 = vsyncpa [#allocation4], 0  ;;  %s810_s24 = smov [#allocation5]   ;;  %s692_s28 = scalar_lea.hbm %s1000_s1, 128 }
   0x4   :  { %s33_s25 = sshll.u32 %s810_s24, 4  ;;  %p693_p0 = scmp.ne.s32.totalorder %s1000_s1, %s692_s28  ;;  %s34_s25 = int_to_ptr.vmem [resolvable:$true] %s33_s25 }
   0x5   :  { %p696_p1 = scmp.lt.u32.totalorder %s692_s28, %s1000_s1 }
   0x7   :  { %p698_p2 = pnand %p696_p1, %p693_p0 }
   0x9   :  { %701 = shalt.err (!%p698_p2)
}
   0xa   :  { %s702_s10 = scalar_lea.vmem %s34_s25, 128  ;;  %p707_p4 = scmp.lt.s32.totalorder %s34_s25, %s34_s25 }
   0xb   :  { %p703_p3 = scmp.ne.s32.totalorder %s34_s25, %s702_s10  ;;  %p708_p5 = scmp.lt.s32.totalorder %s702_s10, %s702_s10 }
   0xd   :  { %p709_p6 = por %p708_p5, %p707_p4 }
   0xf   :  { %p710_p7 = pnand %p709_p6, %p703_p3 }
  0x11   :  { %713 = shalt.err (!%p710_p7)
}
  0x12   :  { %s811_s11 = smov 64   ;;  %s812_s12 = smov 4  }
  0x13   :  { %39 = dma.hbm_to_vmem [thread:$0]  %s1000_s1, 128, %s34_s25, [#allocation6], %s811_s11, %s811_s11, %s812_s12  }
  0x14   :  { %s813_s15 = smov [#allocation2]   ;;  %s714_s19 = scalar_lea.hbm %s999_s0, 64 }
  0x15   :  { %s21_s16 = sshll.u32 %s813_s15, 4  ;;  %p715_p8 = scmp.ne.s32.totalorder %s999_s0, %s714_s19  ;;  %s22_s16 = int_to_ptr.vmem [resolvable:$true] %s21_s16 }
  0x16   :  { %p718_p9 = scmp.lt.u32.totalorder %s714_s19, %s999_s0 }
  0x18   :  { %p720_p10 = pnand %p718_p9, %p715_p8 }
  0x1a   :  { %723 = shalt.err (!%p720_p10)
}
  0x1b   :  { %s724_s24 = scalar_lea.vmem %s22_s16, 64  ;;  %p729_p12 = scmp.lt.s32.totalorder %s22_s16, %s22_s16 }
  0x1c   :  { %p725_p11 = scmp.ne.s32.totalorder %s22_s16, %s724_s24  ;;  %p730_p13 = scmp.lt.s32.totalorder %s724_s24, %s724_s24 }
  0x1e   :  { %p731_p0 = por %p730_p13, %p729_p12 }
  0x20   :  { %p732_p1 = pnand %p731_p0, %p725_p11 }
  0x22   :  { %735 = shalt.err (!%p732_p1)
}
  0x23   :  { %s814_s1 = smov 32   ;;  %s815_s25 = smov 2  }
  0x24   :  { %27 = dma.hbm_to_vmem [thread:$0]  %s999_s0, 64, %s22_s16, [#allocation3], %s814_s1, %s814_s1, %s815_s25  }
  0x25   :  { %s816_s28 = smov [#allocation7]   ;;  %s736_s9 = scalar_lea.hbm %s1002_s3, 4096 }
  0x26   :  { %s47_s29 = sshll.u32 %s816_s28, 4  ;;  %p737_p2 = scmp.ne.s32.totalorder %s1002_s3, %s736_s9  ;;  %s48_s29 = int_to_ptr.vmem [resolvable:$true] %s47_s29 }
  0x27   :  { %p740_p3 = scmp.lt.u32.totalorder %s736_s9, %s1002_s3 }
  0x29   :  { %p742_p4 = pnand %p740_p3, %p737_p2 }
  0x2b   :  { %745 = shalt.err (!%p742_p4)
}
  0x2c   :  { %s746_s14 = scalar_lea.vmem %s48_s29, 4096  ;;  %p751_p6 = scmp.lt.s32.totalorder %s48_s29, %s48_s29 }
  0x2d   :  { %p747_p5 = scmp.ne.s32.totalorder %s48_s29, %s746_s14  ;;  %p752_p7 = scmp.lt.s32.totalorder %s746_s14, %s746_s14 }
  0x2f   :  { %p753_p8 = por %p752_p7, %p751_p6 }
  0x31   :  { %p754_p9 = pnand %p753_p8, %p747_p5 }
  0x33   :  { %757 = shalt.err (!%p754_p9)
}
  0x34   :  { %s817_s0 = smov 128   ;;  %s818_s15 = smov 8  }
  0x35   :  { %53 = dma.hbm_to_vmem [thread:$0]  %s1002_s3, 4096, %s48_s29, [#allocation6], %s817_s0, %s817_s0, %s818_s15  }
  0x36   :  { %s819_s18 = smov [#allocation8]   ;;  %s758_s22 = scalar_lea.hbm %s1004_s5, 4096 }
  0x37   :  { %s61_s19 = sshll.u32 %s819_s18, 4  ;;  %p759_p10 = scmp.ne.s32.totalorder %s1004_s5, %s758_s22  ;;  %s62_s19 = int_to_ptr.vmem [resolvable:$true] %s61_s19 }
  0x38   :  { %p762_p11 = scmp.lt.u32.totalorder %s758_s22, %s1004_s5 }
  0x3a   :  { %p764_p12 = pnand %p762_p11, %p759_p10 }
  0x3c   :  { %767 = shalt.err (!%p764_p12)
}
  0x3d   :  { %s768_s28 = scalar_lea.vmem %s62_s19, 4096  ;;  %p773_p0 = scmp.lt.s32.totalorder %s62_s19, %s62_s19 }
  0x3e   :  { %p769_p13 = scmp.ne.s32.totalorder %s62_s19, %s768_s28  ;;  %p774_p1 = scmp.lt.s32.totalorder %s768_s28, %s768_s28 }
  0x40   :  { %p775_p2 = por %p774_p1, %p773_p0 }
  0x42   :  { %p776_p3 = pnand %p775_p2, %p769_p13 }
  0x44   :  { %779 = shalt.err (!%p776_p3)
}
  0x45   :  { %67 = dma.hbm_to_vmem [thread:$0]  %s1004_s5, 4096, %s62_s19, [#allocation9], %s817_s0, %s817_s0, %s818_s15  }
  0x46   :  { %802 = dma.done.wait [#allocation3], 64  }
  0x47   :  { %803 = vsyncadd [#allocation3], 4294967232 }
  0x48   :  { %804 = dma.done.wait [#allocation6], 4224  }
  0x49   :  { %805 = vsyncadd [#allocation6], 4294963072 }
  0x4a   :  { %806 = dma.done.wait [#allocation9], 4096  }
  0x4b   :  { %807 = vsyncadd [#allocation9], 4294963200  ;;  %v820_v0 = vmov 0.0   ;;  %vm821_vm0 = vmmov 0   ;;  %v85_v1 = vld [vmem:[#allocation5] sm:$0xf] }
  0x4c   :  { %583 = vmatprep.subr.bf16.mxu0 %v820_v0  ;;  %585 = vmatprep.mubr.msk.bf16.mxu0 %vm821_vm0, %v820_v0  ;;  %vm98_vm1 = vcmask 1041408   ;;  %v83_v2 = vld [vmem:[#allocation2] sm:$0x3]  ;;  %v143_v3 = vld [vmem:[#allocation7] sm:$0xff]  ;;  %v86_v4 = vpack.c.bf16 %v85_v1, %v85_v1  ;;  %v144_v5 = vld [vmem:[#allocation7 + $0x8] sm:$0xff]  ;;  %vm94_vm2 = vcmask 31744  }
  0x4d   :  { %589 = vmatprep.subr.bf16.mxu1 %v820_v0  ;;  %605 = vmatprep.mubr.msk.bf16.mxu1 %vm821_vm0, %v820_v0  ;;  %v145_v6 = vld [vmem:[#allocation7 + $0x10] sm:$0xff]  ;;  %v146_v7 = vld [vmem:[#allocation7 + $0x18] sm:$0xff]  ;;  %v159_v8 = vpack.c.bf16 %v144_v5, %v143_v3  ;;  %v84_v10 = vpack.c.bf16 %v83_v2, %v83_v2  ;;  %v147_v12 = vld [vmem:[#allocation7 + $0x20] sm:$0xff] }
  0x4e   :  { %v100_v9 = vsel %vm98_vm1, %v86_v4, 0  ;;  %v160_v11 = vpack.c.bf16 %v146_v7, %v145_v6  ;;  %v148_v13 = vld [vmem:[#allocation7 + $0x28] sm:$0xff]  ;;  %v149_v15 = vld [vmem:[#allocation7 + $0x30] sm:$0xff]  ;;  %v150_v16 = vld [vmem:[#allocation7 + $0x38] sm:$0xff] }
  0x4f   :  { %584 = vmatpush3.bf16.msra.mxu0 %v100_v9  ;;  %590 = vmatpush3.bf16.msra.mxu1 %v159_v8  ;;  %v161_v14 = vpack.c.bf16 %v148_v13, %v147_v12  ;;  %v162_v17 = vpack.c.bf16 %v150_v16, %v149_v15  ;;  %v151_v18 = vld [vmem:[#allocation7 + $0x40] sm:$0xff]  ;;  %v152_v19 = vld [vmem:[#allocation7 + $0x48] sm:$0xff]  ;;  %v153_v21 = vld [vmem:[#allocation7 + $0x50] sm:$0xff] }
  0x50   :  { %591 = vmatprep.subr.bf16.mxu1 %v820_v0  ;;  %609 = vmatprep.subr.bf16.mxu0 %v820_v0  ;;  %v163_v20 = vpack.c.bf16 %v152_v19, %v151_v18  ;;  %v154_v22 = vld [vmem:[#allocation7 + $0x58] sm:$0xff]  ;;  %v155_v24 = vld [vmem:[#allocation7 + $0x60] sm:$0xff]  ;;  %v156_v25 = vld [vmem:[#allocation7 + $0x68] sm:$0xff] }
  0x51   :  { %v164_v23 = vpack.c.bf16 %v154_v22, %v153_v21  ;;  %v165_v26 = vpack.c.bf16 %v156_v25, %v155_v24  ;;  %v157_v27 = vld [vmem:[#allocation7 + $0x70] sm:$0xff]  ;;  %v158_v28 = vld [vmem:[#allocation7 + $0x78] sm:$0xff]  ;;  %v216_v30 = vld [vmem:[#allocation8] sm:$0xff] }
  0x52   :  { %586 = vmatmul.mubr.msk.bf16.vlgmr.msra.gmra.mrb[0].mxu0 %vm94_vm2, %v84_v10  ;;  %v166_v29 = vpack.c.bf16 %v158_v28, %v157_v27  ;;  %v217_v31 = vld [vmem:[#allocation8 + $0x8] sm:$0xff]  ;;  %v218_v32 = vld [vmem:[#allocation8 + $0x10] sm:$0xff]  ;;  %v219_v34 = vld [vmem:[#allocation8 + $0x18] sm:$0xff] }
  0x53   :  { %592 = vmatpush3.bf16.msra.mxu1 %v160_v11  ;;  %625 = vmatprep.mubr.msk.bf16.mxu0 %vm821_vm0, %v820_v0  ;;  %v232_v33 = vpack.c.bf16 %v217_v31, %v216_v30  ;;  %v233_v35 = vpack.c.bf16 %v219_v34, %v218_v32  ;;  %v220_v36 = vld [vmem:[#allocation8 + $0x20] sm:$0xff]  ;;  %v221_v37 = vld [vmem:[#allocation8 + $0x28] sm:$0xff]  ;;  %v222_v39 = vld [vmem:[#allocation8 + $0x30] sm:$0xff] }
  0x54   :  { %593 = vmatprep.subr.bf16.mxu1 %v820_v0  ;;  %v234_v38 = vpack.c.bf16 %v221_v37, %v220_v36  ;;  %v223_v40 = vld [vmem:[#allocation8 + $0x38] sm:$0xff]  ;;  %v224_v42 = vld [vmem:[#allocation8 + $0x40] sm:$0xff]  ;;  %v225_v43 = vld [vmem:[#allocation8 + $0x48] sm:$0xff] }
  0x55   :  { %610 = vmatpush3.bf16.msra.mxu0 %v232_v33  ;;  %v235_v41 = vpack.c.bf16 %v223_v40, %v222_v39  ;;  %v236_v44 = vpack.c.bf16 %v225_v43, %v224_v42  ;;  %v226_v45 = vld [vmem:[#allocation8 + $0x50] sm:$0xff]  ;;  %v227_v46 = vld [vmem:[#allocation8 + $0x58] sm:$0xff]  ;;  %v228_v48 = vld [vmem:[#allocation8 + $0x60] sm:$0xff] }
  0x56   :  { %611 = vmatprep.subr.bf16.mxu0 %v820_v0  ;;  %v237_v47 = vpack.c.bf16 %v227_v46, %v226_v45  ;;  %v229_v49 = vld [vmem:[#allocation8 + $0x68] sm:$0xff]  ;;  %v299_v51 = vld [vmem:[#allocation5 + $0x4] sm:$0xf]  ;;  %v532_v52 = vld [vmem:[%s1001_s2] ss:$0 sm:$0xff] }
  0x57   :  { %594 = vmatpush3.bf16.msra.mxu1 %v161_v14  ;;  %v238_v50 = vpack.c.bf16 %v229_v49, %v228_v48  ;;  %v300_v53 = vpack.c.bf16 %v299_v51, %v299_v51  ;;  %v296_v61 = vld [vmem:[#allocation2 + $0x2] sm:$0x3]  ;;  %v231_v1 = vld [vmem:[#allocation8 + $0x78] sm:$0xff]  ;;  %v534_v3 = vld [vmem:[%s1003_s4] ss:$0 sm:$0xff] }
  0x58   :  { %595 = vmatprep.subr.bf16.mxu1 %v820_v0  ;;  %v297_v62 = vpack.c.bf16 %v296_v61, %v296_v61  ;;  %v230_v63 = vld [vmem:[#allocation8 + $0x70] sm:$0xff]  ;;  %v357_v7 = vld [vmem:[#allocation7 + $0x80] sm:$0xff]  ;;  %v358_v8 = vld [vmem:[#allocation7 + $0x88] sm:$0xff] }
  0x59   :  { %612 = vmatpush3.bf16.msra.mxu0 %v233_v35  ;;  %v313_v60 = vsel %vm98_vm1, %v300_v53, 0  ;;  %v239_v2 = vpack.c.bf16 %v231_v1, %v230_v63  ;;  %v373_v12 = vpack.c.bf16 %v358_v8, %v357_v7  ;;  %v359_v14 = vld [vmem:[#allocation7 + $0x90] sm:$0xff]  ;;  %v360_v15 = vld [vmem:[#allocation7 + $0x98] sm:$0xff]  ;;  %v361_v18 = vld [vmem:[#allocation7 + $0xa0] sm:$0xff] }
  0x5a   :  { %613 = vmatprep.subr.bf16.mxu0 %v820_v0  ;;  %v374_v16 = vpack.c.bf16 %v360_v15, %v359_v14  ;;  %v362_v19 = vld [vmem:[#allocation7 + $0xa8] sm:$0xff]  ;;  %v363_v24 = vld [vmem:[#allocation7 + $0xb0] sm:$0xff]  ;;  %v364_v25 = vld [vmem:[#allocation7 + $0xb8] sm:$0xff] }
  0x5b   :  { %596 = vmatpush3.bf16.msra.mxu1 %v162_v17  ;;  %v365_v27 = vld [vmem:[#allocation7 + $0xc0] sm:$0xff]  ;;  %v366_v28 = vld [vmem:[#allocation7 + $0xc8] sm:$0xff]  ;;  %v367_v30 = vld [vmem:[#allocation7 + $0xd0] sm:$0xff] }
  0x5c   :  { %597 = vmatprep.subr.bf16.mxu1 %v820_v0  ;;  %v368_v31 = vld [vmem:[#allocation7 + $0xd8] sm:$0xff]  ;;  %v369_v33 = vld [vmem:[#allocation7 + $0xe0] sm:$0xff]  ;;  %v370_v34 = vld [vmem:[#allocation7 + $0xe8] sm:$0xff] }
  0x5d   :  { %614 = vmatpush3.bf16.msra.mxu0 %v234_v38  ;;  %v378_v32 = vpack.c.bf16 %v368_v31, %v367_v30  ;;  %v537_v35 = vld [vmem:[%s1001_s2 + $0x1] ss:$0 sm:$0xff]  ;;  %v379_v36 = vpack.c.bf16 %v370_v34, %v369_v33  ;;  %v372_v38 = vld [vmem:[#allocation7 + $0xf8] sm:$0xff]  ;;  %v432_v42 = vld [vmem:[#allocation8 + $0x80] sm:$0xff] }
  0x5e   :  { %615 = vmatprep.subr.bf16.mxu0 %v820_v0  ;;  %v371_v37 = vld [vmem:[#allocation7 + $0xf0] sm:$0xff]  ;;  %v433_v43 = vld [vmem:[#allocation8 + $0x88] sm:$0xff]  ;;  %v435_v46 = vld [vmem:[#allocation8 + $0x98] sm:$0xff] }
  0x5f   :  { %598 = vmatpush3.bf16.msra.mxu1 %v163_v20  ;;  %v380_v40 = vpack.c.bf16 %v372_v38, %v371_v37  ;;  %v434_v45 = vld [vmem:[#allocation8 + $0x90] sm:$0xff]  ;;  %v436_v48 = vld [vmem:[#allocation8 + $0xa0] sm:$0xff]  ;;  %v437_v49 = vld [vmem:[#allocation8 + $0xa8] sm:$0xff] }
  0x60   :  { %599 = vmatprep.subr.bf16.mxu1 %v820_v0  ;;  %v438_v51 = vld [vmem:[#allocation8 + $0xb0] sm:$0xff]  ;;  %v445_v61 = vld [vmem:[#allocation8 + $0xe8] sm:$0xff]  ;;  %v447_v1 = vld [vmem:[#allocation8 + $0xf8] sm:$0xff] }
  0x61   :  { %616 = vmatpush3.bf16.msra.mxu0 %v235_v41  ;;  %v446_v63 = vld [vmem:[#allocation8 + $0xf0] sm:$0xff] }
  0x62   :  { %617 = vmatprep.subr.bf16.mxu0 %v820_v0 }
  0x63   :  { %600 = vmatpush3.bf16.msra.mxu1 %v164_v23  ;;  %v375_v23 = vpack.c.bf16 %v362_v19, %v361_v18 }
  0x64   :  { %601 = vmatprep.subr.bf16.mxu1 %v820_v0 }
  0x65   :  { %618 = vmatpush3.bf16.msra.mxu0 %v236_v44  ;;  %v448_v44 = vpack.c.bf16 %v433_v43, %v432_v42 }
  0x66   :  { %619 = vmatprep.subr.bf16.mxu0 %v820_v0 }
  0x67   :  { %602 = vmatpush3.bf16.msra.mxu1 %v165_v26  ;;  %v376_v26 = vpack.c.bf16 %v364_v25, %v363_v24 }
  0x68   :  { %603 = vmatprep.subr.bf16.mxu1 %v820_v0 }
  0x69   :  { %620 = vmatpush3.bf16.msra.mxu0 %v237_v47  ;;  %v449_v47 = vpack.c.bf16 %v435_v46, %v434_v45 }
  0x6a   :  { %621 = vmatprep.subr.bf16.mxu0 %v820_v0 }
  0x6b   :  { %604 = vmatpush3.bf16.msra.mxu1 %v166_v29  ;;  %v377_v29 = vpack.c.bf16 %v366_v28, %v365_v27 }
  0x6c   :  { %629 = vmatprep.subr.bf16.mxu1 %v820_v0 }
  0x6d   :  { %622 = vmatpush3.bf16.msra.mxu0 %v238_v50  ;;  %v450_v50 = vpack.c.bf16 %v437_v49, %v436_v48 }
  0x6e   :  { %623 = vmatprep.subr.bf16.mxu0 %v820_v0 }
  0x71   :  { %624 = vmatpush3.bf16.msra.mxu0 %v239_v2  ;;  %v455_v2 = vpack.c.bf16 %v447_v1, %v446_v63 }
  0x72   :  { %635 = vmatprep.subr.bf16.mxu0 %v820_v0 }
 0x125   :  { %v136_v54 = vpop.f32.mrb[0].mxu0 }
 0x126   :  { %v137_v55 = vadd.f32 %v532_v52, %v136_v54  ;;  %v587_v56 = vpop.f32.mrb[1].mxu0  ;;  %v439_v52 = vld [vmem:[#allocation8 + $0xb8] sm:$0xff]  ;;  %v440_v54 = vld [vmem:[#allocation8 + $0xc0] sm:$0xff] }
 0x127   :  { %v139_v57 = vpop.f32.mrb[2].mxu0  ;;  %v451_v53 = vpack.c.bf16 %v439_v52, %v438_v51 }
 0x128   :  { %v142_v58 = vpack.c.bf16 %v137_v55, %v137_v55  ;;  %v588_v59 = vpop.f32.mrb[3].mxu0  ;;  %v441_v55 = vld [vmem:[#allocation8 + $0xc8] sm:$0xff]  ;;  %v442_v57 = vld [vmem:[#allocation8 + $0xd0] sm:$0xff] }
 0x129   :  { %v452_v56 = vpack.c.bf16 %v441_v55, %v440_v54 }
 0x12a   :  { %606 = vmatmul.mubr.bf16.vlgmr.msra.gmra.mrb[0].mxu1 %v142_v58  ;;  %v443_v58 = vld [vmem:[#allocation8 + $0xd8] sm:$0xff] }
 0x12b   :  { %630 = vmatpush3.bf16.msra.mxu1 %v313_v60  ;;  %631 = vmatprep.mubr.msk.bf16.mxu1 %vm821_vm0, %v820_v0  ;;  %v453_v59 = vpack.c.bf16 %v443_v58, %v442_v57  ;;  %v444_v60 = vld [vmem:[#allocation8 + $0xe0] sm:$0xff] }
 0x12c   :  { %655 = vmatprep.subr.bf16.mxu1 %v820_v0 }
 0x132   :  { %632 = vmatmul.mubr.msk.bf16.vlgmr.msra.gmra.mrb[4].mxu1 %vm94_vm2, %v297_v62  ;;  %v454_v62 = vpack.c.bf16 %v445_v61, %v444_v60 }
 0x133   :  { %671 = vmatprep.mubr.msk.bf16.mxu1 %vm821_vm0, %v820_v0  ;;  %656 = vmatpush3.bf16.msra.mxu1 %v448_v44 }
 0x134   :  { %657 = vmatprep.subr.bf16.mxu1 %v820_v0 }
 0x137   :  { %658 = vmatpush3.bf16.msra.mxu1 %v449_v47 }
 0x138   :  { %659 = vmatprep.subr.bf16.mxu1 %v820_v0 }
 0x13b   :  { %660 = vmatpush3.bf16.msra.mxu1 %v450_v50 }
 0x13c   :  { %661 = vmatprep.subr.bf16.mxu1 %v820_v0 }
 0x13f   :  { %662 = vmatpush3.bf16.msra.mxu1 %v451_v53 }
 0x140   :  { %663 = vmatprep.subr.bf16.mxu1 %v820_v0 }
 0x143   :  { %664 = vmatpush3.bf16.msra.mxu1 %v452_v56 }
 0x144   :  { %665 = vmatprep.subr.bf16.mxu1 %v820_v0 }
 0x147   :  { %666 = vmatpush3.bf16.msra.mxu1 %v453_v59 }
 0x148   :  { %667 = vmatprep.subr.bf16.mxu1 %v820_v0 }
 0x14b   :  { %668 = vmatpush3.bf16.msra.mxu1 %v454_v62 }
 0x14c   :  { %669 = vmatprep.subr.bf16.mxu1 %v820_v0 }
 0x14f   :  { %670 = vmatpush3.bf16.msra.mxu1 %v455_v2 }
 0x1fd   :  { %v208_v4 = vpop.f32.mrb[0].mxu1 }
 0x1fe   :  { %v209_v5 = vadd.f32 %v534_v3, %v208_v4  ;;  %v607_v6 = vpop.f32.mrb[1].mxu1  ;;  %v535_v3 = vld [vmem:[%s1005_s6] ss:$0 sm:$0xff] }
 0x1ff   :  { %v211_v9 = vpop.f32.mrb[2].mxu1 }
 0x200   :  { %v214_v10 = vmax.f32 %v209_v5, 0.0  ;;  %v608_v11 = vpop.f32.mrb[3].mxu1 }
 0x202   :  { %v215_v13 = vpack.c.bf16 %v214_v10, %v214_v10 }
 0x204   :  { %626 = vmatmul.mubr.bf16.vlgmr.msra.gmra.mrb[4].mxu0 %v215_v13 }
 0x205   :  { %636 = vmatpush3.bf16.msra.mxu0 %v373_v12  ;;  %v349_v17 = vpop.f32.mrb[4].mxu1  ;;  %651 = vmatprep.mubr.msk.bf16.mxu0 %vm821_vm0, %v820_v0 }
 0x206   :  { %637 = vmatprep.subr.bf16.mxu0 %v820_v0  ;;  %v633_v20 = vpop.f32.mrb[5].mxu1  ;;  %v350_v39 = vadd.f32 %v537_v35, %v349_v17 }
 0x207   :  { %v352_v21 = vpop.f32.mrb[6].mxu1 }
 0x208   :  { %v634_v22 = vpop.f32.mrb[7].mxu1  ;;  %v355_v41 = vpack.c.bf16 %v350_v39, %v350_v39 }
 0x209   :  { %638 = vmatpush3.bf16.msra.mxu0 %v374_v16  ;;  %v542_v22 = vld [vmem:[%s1005_s6 + $0x1] ss:$0 sm:$0xff] }
 0x20a   :  { %639 = vmatprep.subr.bf16.mxu0 %v820_v0 }
 0x20d   :  { %640 = vmatpush3.bf16.msra.mxu0 %v375_v23 }
 0x20e   :  { %641 = vmatprep.subr.bf16.mxu0 %v820_v0 }
 0x211   :  { %642 = vmatpush3.bf16.msra.mxu0 %v376_v26 }
 0x212   :  { %643 = vmatprep.subr.bf16.mxu0 %v820_v0 }
 0x215   :  { %644 = vmatpush3.bf16.msra.mxu0 %v377_v29 }
 0x216   :  { %645 = vmatprep.subr.bf16.mxu0 %v820_v0 }
 0x219   :  { %646 = vmatpush3.bf16.msra.mxu0 %v378_v32 }
 0x21a   :  { %647 = vmatprep.subr.bf16.mxu0 %v820_v0 }
 0x21d   :  { %648 = vmatpush3.bf16.msra.mxu0 %v379_v36 }
 0x21e   :  { %649 = vmatprep.subr.bf16.mxu0 %v820_v0  ;;  %v540_v0 = vld [vmem:[%s1003_s4 + $0x1] ss:$0 sm:$0xff]  ;;  %s822_s4 = smov [#allocation10]  }
 0x21f   :  { %s518_s16 = sshll.u32 %s822_s4, 4  ;;  %s519_s16 = int_to_ptr.vmem [resolvable:$true] %s518_s16 }
 0x220   :  { %s780_s17 = scalar_lea.vmem %s519_s16, 64  ;;  %p785_p5 = scmp.lt.s32.totalorder %s519_s16, %s519_s16 }
 0x221   :  { %650 = vmatpush3.bf16.msra.mxu0 %v380_v40  ;;  %p781_p4 = scmp.ne.s32.totalorder %s519_s16, %s780_s17  ;;  %p786_p6 = scmp.lt.s32.totalorder %s780_s17, %s780_s17 }
 0x223   :  { %p787_p7 = por %p786_p6, %p785_p5 }
 0x224   :  { %652 = vmatmul.mubr.bf16.vlgmr.msra.gmra.mrb[8].mxu0 %v355_v41 }
 0x225   :  { %p788_p8 = pnand %p787_p7, %p781_p4 }
 0x2d7   :  { %v281_v4 = vpop.f32.mrb[4].mxu0 }
 0x2d8   :  { %v282_v5 = vadd.f32 %v535_v3, %v281_v4  ;;  %v627_v6 = vpop.f32.mrb[5].mxu0 }
 0x2d9   :  { %v284_v7 = vpop.f32.mrb[6].mxu0 }
 0x2da   :  { %v628_v8 = vpop.f32.mrb[7].mxu0  ;;  %v287_v9 = vmul.f32 %v282_v5, %v282_v5 }
 0x2dc   :  { %v288_v10 = vsel %vm98_vm1, %v287_v9, 0.0 }
 0x2dd   :  { %289 = vadd.xlane.f32.xlu0 %v288_v10 }
 0x2f7   :  { %v423_v11 = vpop.f32.mrb[8].mxu0 }
 0x2f8   :  { %v424_v12 = vadd.f32 %v540_v0, %v423_v11  ;;  %v653_v13 = vpop.f32.mrb[9].mxu0 }
 0x2f9   :  { %v426_v14 = vpop.f32.mrb[10].mxu0 }
 0x2fa   :  { %v429_v15 = vmax.f32 %v424_v12, 0.0  ;;  %v654_v16 = vpop.f32.mrb[11].mxu0 }
 0x2fc   :  { %v430_v17 = vpack.c.bf16 %v429_v15, %v429_v15 }
 0x2fe   :  { %672 = vmatmul.mubr.bf16.vlgmr.msra.gmra.mrb[8].mxu1 %v430_v17 }
 0x36a   :  { %v290_v18 = vpop.xlane.xlu0 %289 }
 0x36b   :  { %v291_v19 = vmax.f32 %v290_v18, 1e-24 }
 0x36d   :  { %688 = vrsqrt.f32 %v291_v19 }
 0x377   :  { %v689_v20 = vpop.eup %688 }
 0x378   :  { %v293_v21 = vmul.f32 %v689_v20, %v282_v5 }
 0x37a   :  { %294 = vst [vmem:[#allocation10] sm:$0x3] %v293_v21 }
 0x3d1   :  { %v498_v23 = vpop.f32.mrb[8].mxu1 }
 0x3d2   :  { %v499_v24 = vadd.f32 %v542_v22, %v498_v23  ;;  %v673_v25 = vpop.f32.mrb[9].mxu1 }
 0x3d3   :  { %v501_v26 = vpop.f32.mrb[10].mxu1 }
 0x3d4   :  { %v674_v27 = vpop.f32.mrb[11].mxu1  ;;  %v504_v28 = vmul.f32 %v499_v24, %v499_v24 }
 0x3d6   :  { %v505_v29 = vsel %vm98_vm1, %v504_v28, 0.0 }
 0x3d7   :  { %506 = vadd.xlane.f32.xlu0 %v505_v29 }
 0x464   :  { %v507_v30 = vpop.xlane.xlu0 %506 }
 0x465   :  { %v508_v31 = vmax.f32 %v507_v30, 1e-24 }
 0x467   :  { %690 = vrsqrt.f32 %v508_v31 }
 0x471   :  { %v691_v32 = vpop.eup %690 }
 0x472   :  { %v510_v33 = vmul.f32 %v691_v32, %v499_v24 }
 0x474   :  { %512 = vst [vmem:[#allocation10 + $0x2] sm:$0x3] %v510_v33 }
 0x475   :  { %791 = shalt.err (!%p788_p8)
}
 0x476   :  { %s792_s19 = scalar_lea.hbm %s1006_s7, 64 }
 0x477   :  { %p793_p9 = scmp.ne.s32.totalorder %s1006_s7, %s792_s19  ;;  %p796_p10 = scmp.lt.u32.totalorder %s792_s19, %s1006_s7 }
 0x479   :  { %p798_p11 = pnand %p796_p10, %p793_p9 }
 0x47b   :  { %801 = shalt.err (!%p798_p11)
}
 0x47c   :  { %524 = dma.vmem_to_hbm [thread:$0]  %s519_s16, 64, %s1006_s7, [#allocation4], %s814_s1, %s814_s1, %s815_s25  }
 0x47d   :  { %808 = dma.done.wait [#allocation4], 64  }
 0x47e   :  { %809 = vsyncadd [#allocation4], 4294967232 }
 0x47f   :  { %528 = vsyncpa [#allocation3], 1 }
 0x480   :  { %529 = vsyncpa [#allocation6], 1 }
 0x481   :  { %530 = vsyncpa [#allocation9], 1 }
 0x482   :  { %531 = vsyncpa [#allocation4], 1 }

</bundles_post_ra>
